<compile_context>
chip_gen: v5e
topology: v5e:2x2
jax: 0.10.0
libtpu: 0.0.40
codegen_flags: <defaults>
</compile_context>

<pallas_src>
import functools

import jax
import jax.numpy as jnp
from jax.experimental import pallas as pl
from jax.experimental.pallas import tpu as pltpu


def _gram_loss_kernel(x_ref, y_ref, out_ref, g_ref, *, hw, tk, needs_mask,
                      contract_axis):
    # contract_axis == 2: blocks are (Bt, C, TK)  (4-D NCHW path, HW on lanes)
    # contract_axis == 1: blocks are (Bt, TK, C)  (3-D (B,HW,C) path, HW on sublanes)
    # out_ref: (1, Bt, C) f32 per-batch partial sums (written at last k step).
    # g_ref:   (Bt, C, C) f32 scratch, resident across the k (HW) grid axis.
    k = pl.program_id(1)
    nk = pl.num_programs(1)

    @pl.when(k == 0)
    def _():
        g_ref[...] = jnp.zeros_like(g_ref)

    x = x_ref[...]
    y = y_ref[...]

    dims = (((contract_axis,), (contract_axis,)), ((0,), (0,)))  # contract HW, batch Bt

    def accumulate(xv, yv):
        gx = jax.lax.dot_general(xv, xv, dimension_numbers=dims,
                                 preferred_element_type=jnp.float32)
        gy = jax.lax.dot_general(yv, yv, dimension_numbers=dims,
                                 preferred_element_type=jnp.float32)
        g_ref[...] += gx - gy

    if needs_mask:
        # Only the final (partial) HW tile pays the mask cost.
        @pl.when(k < nk - 1)
        def _():
            accumulate(x, y)

        @pl.when(k == nk - 1)
        def _():
            valid = hw - k * tk
            pos = jax.lax.broadcasted_iota(jnp.int32, x.shape,
                                           dimension=contract_axis)
            keep = pos < valid
            accumulate(jnp.where(keep, x, jnp.zeros_like(x)),
                       jnp.where(keep, y, jnp.zeros_like(y)))
    else:
        accumulate(x, y)

    @pl.when(k == nk - 1)
    def _():
        g = g_ref[...] * jnp.float32(1.0 / hw)          # normalized (gmx - gmy)
        out_ref[...] = jnp.sum(g * g, axis=2)[None]      # (1, Bt, C)


_LANE_ALIGN = 256          # multiple of 128 (v5e MXU) and 256 (v6e/v7x MXU)
_PIPE_BUFS = 2             # default BlockSpec double-buffering


def _vmem_budgets():
    """Generation-aware VMEM sizing (v5e/v6e: 128 MiB, v7x: 64 MiB)."""
    cap = None
    try:
        cap = getattr(pltpu.get_tpu_info(), "vmem_capacity_bytes", None)
    except Exception:  # pragma: no cover - fall back to conservative numbers
        cap = None
    if not cap:
        cap = 64 * 1024 * 1024                       # conservative (v7x-sized)
    input_budget = min(cap // 4, 32 * 1024 * 1024)   # x+y, double-buffered
    vmem_limit = min(int(cap * 0.70), 100 * 1024 * 1024)
    return input_budget, vmem_limit


def _pick_bt(B, C, HW, itemsize, input_budget):
    """Fuse batch elements per grid step for small C, but keep >= 2 batch blocks
    (megacore on v7x) whenever B >= 2."""
    if C >= 128 or B <= 1:
        return 1
    cap = min(max(1, B // 2), 64)
    best = 1
    best_even = None
    for cand in range(cap, 0, -1):
        if B % cand != 0:
            continue
        # must at least fit a _LANE_ALIGN-wide tile of x and y, double-buffered
        if 2 * _PIPE_BUFS * cand * C * min(HW, _LANE_ALIGN) * itemsize > input_budget:
            continue
        if best == 1:
            best = cand
        if (B // cand) % 2 == 0:
            best_even = cand
            break
    if best_even is not None and best_even * 2 >= best:
        return best_even     # prefer an even number of batch blocks (2 TCs)
    return best


def _pick_tk(C, HW, itemsize, input_budget, bt):
    """HW tile: as large as fits the input budget; prefer a divisor of HW so the
    remainder mask disappears."""
    max_elems = input_budget // (2 * _PIPE_BUFS * bt * C * itemsize)
    if HW <= max(max_elems, _LANE_ALIGN):
        return HW, False
    tk = max(_LANE_ALIGN, (max_elems // _LANE_ALIGN) * _LANE_ALIGN)
    if HW % tk == 0:
        return tk, False
    # snap down to a divisor of HW (multiple of _LANE_ALIGN) if it stays big enough
    for cand in range(tk, _LANE_ALIGN - 1, -_LANE_ALIGN):
        if HW % cand == 0:
            if cand * 2 >= tk:
                return cand, False
            break
    return tk, True


def gram_loss(x, y, loss_weight=1.0):
    """Pallas implementation of GramLoss.forward.

    Accepts NCHW (B, C, H, W) or the module's 3-D form (B, HW, C).
    Returns a scalar f32 loss.
    """
    if x.ndim == 4:
        b_, c_, h_, w_ = x.shape
        x = x.reshape(b_, c_, h_ * w_)        # natural NCHW flatten: (B, C, HW)
        y = y.reshape(b_, c_, h_ * w_)
        B, C, HW = x.shape
        contract_axis = 2                     # HW on the lane axis
    else:
        # (B, HW, C): keep layout as-is (no wrapper HBM transpose); contract sublanes.
        B, HW, C = x.shape
        contract_axis = 1

    itemsize = jnp.dtype(x.dtype).itemsize
    input_budget, vmem_limit = _vmem_budgets()
    bt = _pick_bt(B, C, HW, itemsize, input_budget)
    tk, needs_mask = _pick_tk(C, HW, itemsize, input_budget, bt)
    nb = B // bt
    nk = pl.cdiv(HW, tk)
    # TODO(synk): for B == 1 on v7x, additionally split the HW axis into two
    # "parallel" halves (separate partial outputs) so the second TensorCore is used.

    if contract_axis == 2:
        block = (bt, C, tk)
        in_map = lambda b, k: (b, 0, k)
    else:
        block = (bt, tk, C)
        in_map = lambda b, k: (b, k, 0)

    kernel = functools.partial(_gram_loss_kernel, hw=HW, tk=tk,
                               needs_mask=needs_mask, contract_axis=contract_axis)

    cost = pl.CostEstimate(
        flops=4 * B * HW * C * C,                               # two Gram matmuls
        transcendentals=0,
        bytes_accessed=2 * B * C * HW * itemsize + B * C * 4,
    )

    partials = pl.pallas_call(
        kernel,
        out_shape=jax.ShapeDtypeStruct((nb, bt, C), jnp.float32),
        grid_spec=pltpu.PrefetchScalarGridSpec(
            num_scalar_prefetch=0,
            grid=(nb, nk),
            in_specs=[
                pl.BlockSpec(block, in_map),
                pl.BlockSpec(block, in_map),
            ],
            out_specs=pl.BlockSpec((1, bt, C), lambda b, k: (b, 0, 0)),
            scratch_shapes=[pltpu.VMEM((bt, C, C), jnp.float32)],
        ),
        compiler_params=pltpu.CompilerParams(
            dimension_semantics=("parallel", "arbitrary"),  # batch // cores, HW reduction
            vmem_limit_bytes=vmem_limit,
        ),
        cost_estimate=cost,
    )(x, y)

    total = jnp.sum(partials)
    return (total / (B * C * C)).astype(jnp.float32) * jnp.float32(loss_weight)


def _gram_loss_ref(x, y, loss_weight=1.0):
    if x.ndim == 4:
        b, c, h, w = x.shape
        x = x.reshape(b, c, h * w).transpose(0, 2, 1)
        y = y.reshape(b, c, h * w).transpose(0, 2, 1)
    _, hw, _ = x.shape
    gmx = jnp.einsum("bnc,bnd->bcd", x, x) / hw
    gmy = jnp.einsum("bnc,bnd->bcd", y, y) / hw
    return jnp.mean((gmx - gmy) ** 2) * loss_weight


if __name__ == "__main__":
    key = jax.random.PRNGKey(0)
    kx, ky, kx3, ky3 = jax.random.split(key, 4)

    # 4-D NCHW path: batch=2, channels=4, spatial=16x16
    x4 = jax.random.normal(kx, (2, 4, 16, 16), dtype=jnp.float32)
    y4 = jax.random.normal(ky, (2, 4, 16, 16), dtype=jnp.float32)
    loss4 = gram_loss(x4, y4, loss_weight=1.0)
    jax.block_until_ready(loss4)
    ref4 = _gram_loss_ref(x4, y4, loss_weight=1.0)
    assert jnp.allclose(loss4, ref4, rtol=1e-4, atol=1e-6), (loss4, ref4)

    # 3-D (B, HW, C) path: batch=2, hw=64, channels=32 (no wrapper transpose)
    x3 = jax.random.normal(kx3, (2, 64, 32), dtype=jnp.float32)
    y3 = jax.random.normal(ky3, (2, 64, 32), dtype=jnp.float32)
    loss3 = gram_loss(x3, y3, loss_weight=0.5)
    jax.block_until_ready(loss3)
    ref3 = _gram_loss_ref(x3, y3, loss_weight=0.5)
    assert jnp.allclose(loss3, ref3, rtol=1e-4, atol=1e-6), (loss3, ref3)

    print("KERNEL_OK")
</pallas_src>

<mosaic_0001>
module attributes {stable_mosaic.version = 11 : i64} {
  func.func @_gram_loss_kernel(%arg0: i32, %arg1: i32, %arg2: memref<1x4x256xf32, #tpu.memory_space<vmem>>, %arg3: memref<1x4x256xf32, #tpu.memory_space<vmem>>, %arg4: memref<1x1x4xf32, #tpu.memory_space<vmem>>, %arg5: memref<1x4x4xf32, #tpu.memory_space<vmem>>) attributes {dimension_semantics = [#tpu.dimension_semantics<parallel>, #tpu.dimension_semantics<arbitrary>], iteration_bounds = array<i64: 2, 1>, scalar_prefetch = 0 : i64, scratch_operands = 1 : i64, tpu.core_type = #tpu.core_type<tc>, window_params = [{transform_indices = @transform_0, window_bounds = array<i64: 1, 4, 256>}, {transform_indices = @transform_1, window_bounds = array<i64: 1, 4, 256>}, {transform_indices = @transform_2, window_bounds = array<i64: 1, 1, 4>}]} {
    %c0_i32 = arith.constant 0 : i32
    %0 = arith.cmpi eq, %arg1, %c0_i32 : i32
    %1 = arith.extui %0 : i1 to i32
    %c0_i32_0 = arith.constant 0 : i32
    %2 = arith.cmpi ne, %1, %c0_i32_0 : i32
    scf.if %2 {
      %cst_15 = arith.constant 0.000000e+00 : f32
      %14 = vector.broadcast %cst_15 : f32 to vector<1x4x4xf32>
      %c0_16 = arith.constant 0 : index
      %c0_17 = arith.constant 0 : index
      %c0_18 = arith.constant 0 : index
      %15 = vector.load %arg5[%c0_16, %c0_17, %c0_18] : memref<1x4x4xf32, #tpu.memory_space<vmem>>, vector<1x4x4xf32>
      tpu.vector_store %arg5[%c0_16, %c0_17, %c0_18], %14 {strides = array<i32>} : memref<1x4x4xf32, #tpu.memory_space<vmem>>, vector<1x4x4xf32>,
    } else {
    }
    %c0 = arith.constant 0 : index
    %c0_1 = arith.constant 0 : index
    %c0_2 = arith.constant 0 : index
    %3 = vector.load %arg2[%c0, %c0_1, %c0_2] : memref<1x4x256xf32, #tpu.memory_space<vmem>>, vector<1x4x256xf32>
    %c0_3 = arith.constant 0 : index
    %c0_4 = arith.constant 0 : index
    %c0_5 = arith.constant 0 : index
    %4 = vector.load %arg3[%c0_3, %c0_4, %c0_5] : memref<1x4x256xf32, #tpu.memory_space<vmem>>, vector<1x4x256xf32>
    %cst = arith.constant dense<0.000000e+00> : vector<1x4x4xf32>
    %5 = tpu.matmul %3, %3, %cst {dimension_numbers = #tpu.dot_dimension_numbers<[2], [2], [1], [1], [0, 0, 0, 1, 1, 1], [0], [0]>} : vector<1x4x256xf32>, vector<1x4x256xf32>, vector<1x4x4xf32> -> vector<1x4x4xf32>
    %cst_6 = arith.constant dense<0.000000e+00> : vector<1x4x4xf32>
    %6 = tpu.matmul %4, %4, %cst_6 {dimension_numbers = #tpu.dot_dimension_numbers<[2], [2], [1], [1], [0, 0, 0, 1, 1, 1], [0], [0]>} : vector<1x4x256xf32>, vector<1x4x256xf32>, vector<1x4x4xf32> -> vector<1x4x4xf32>
    %c0_7 = arith.constant 0 : index
    %c0_8 = arith.constant 0 : index
    %c0_9 = arith.constant 0 : index
    %7 = vector.load %arg5[%c0_7, %c0_8, %c0_9] : memref<1x4x4xf32, #tpu.memory_space<vmem>>, vector<1x4x4xf32>
    %8 = arith.subf %5, %6 : vector<1x4x4xf32>
    %9 = arith.addf %7, %8 : vector<1x4x4xf32>
    %c0_10 = arith.constant 0 : index
    %c0_11 = arith.constant 0 : index
    %c0_12 = arith.constant 0 : index
    %10 = vector.load %arg5[%c0_10, %c0_11, %c0_12] : memref<1x4x4xf32, #tpu.memory_space<vmem>>, vector<1x4x4xf32>
    tpu.vector_store %arg5[%c0_10, %c0_11, %c0_12], %9 {strides = array<i32>} : memref<1x4x4xf32, #tpu.memory_space<vmem>>, vector<1x4x4xf32>,
    %c0_i32_13 = arith.constant 0 : i32
    %11 = arith.cmpi eq, %arg1, %c0_i32_13 : i32
    %12 = arith.extui %11 : i1 to i32
    %c0_i32_14 = arith.constant 0 : i32
    %13 = arith.cmpi ne, %12, %c0_i32_14 : i32
    scf.if %13 {
      %c0_15 = arith.constant 0 : index
      %c0_16 = arith.constant 0 : index
      %c0_17 = arith.constant 0 : index
      %14 = vector.load %arg5[%c0_15, %c0_16, %c0_17] : memref<1x4x4xf32, #tpu.memory_space<vmem>>, vector<1x4x4xf32>
      %cst_18 = arith.constant 3.906250e-03 : f32
      %15 = vector.broadcast %cst_18 : f32 to vector<1x4x4xf32>
      %16 = arith.mulf %14, %15 : vector<1x4x4xf32>
      %17 = arith.mulf %16, %16 : vector<1x4x4xf32>
      %cst_19 = arith.constant dense<0.000000e+00> : vector<1x4xf32>
      %18 = vector.multi_reduction <add>, %17, %cst_19 [2] : vector<1x4x4xf32> to vector<1x4xf32>
      %19 = vector.shape_cast %18 : vector<1x4xf32> to vector<1x1x4xf32>
      %c0_20 = arith.constant 0 : index
      %c0_21 = arith.constant 0 : index
      %c0_22 = arith.constant 0 : index
      %20 = vector.load %arg4[%c0_20, %c0_21, %c0_22] : memref<1x1x4xf32, #tpu.memory_space<vmem>>, vector<1x1x4xf32>
      tpu.vector_store %arg4[%c0_20, %c0_21, %c0_22], %19 {strides = array<i32>} : memref<1x1x4xf32, #tpu.memory_space<vmem>>, vector<1x1x4xf32>,
    } else {
    }
    return
  }
  func.func @transform_0(%arg0: i32, %arg1: i32) -> (i32, i32, i32) {
    %c0_i32 = arith.constant 0 : i32
    %c0_i32_0 = arith.constant 0 : i32
    return %arg0, %c0_i32, %arg1 : i32, i32, i32
  }
  func.func @transform_1(%arg0: i32, %arg1: i32) -> (i32, i32, i32) {
    %c0_i32 = arith.constant 0 : i32
    %c0_i32_0 = arith.constant 0 : i32
    return %arg0, %c0_i32, %arg1 : i32, i32, i32
  }
  func.func @transform_2(%arg0: i32, %arg1: i32) -> (i32, i32, i32) {
    %c0_i32 = arith.constant 0 : i32
    %c0_i32_0 = arith.constant 0 : i32
    %c0_i32_1 = arith.constant 0 : i32
    return %arg0, %c0_i32, %c0_i32_0 : i32, i32, i32
  }
}

</mosaic_0001>

<bundles_post_ra>
// kernel: tpu_custom_call.1
= control target key start
LH: loop header
LB: loop body
LE: loop exit
PB: predicated region body
PF: predicated region fallthrough
CT: control target
= control target key end

     0   :  { %7 = vsyncpa [#allocation4], 0  ;;  %s851_s0 = inlined_call_operand.hbm [shape: f32[2,4,256], index: 0, kind: input, shape index: {}]   ;;  %s852_s1 = inlined_call_operand.hbm [shape: f32[2,4,256], index: 1, kind: input, shape index: {}]   ;;  %s853_s2 = inlined_call_operand.hbm [shape: f32[2,1,4], index: 2, kind: output, shape index: {}]  }
   0x1   :  { %9 = vsyncpa [#allocation4 + $0x1], 0 }
   0x2   :  { %10 = vsyncpa [#allocation7], 0 }
   0x3   :  { %12 = vsyncpa [#allocation7 + $0x1], 0 }
   0x4   :  { %13 = vsyncpa [#allocation5], 0 }
   0x5   :  { %15 = vsyncpa [#allocation5 + $0x1], 0  ;;  %s719_s9 = smov 0   ;;  %s721_s10 = smov 0  }
   0x6   :  { %s723_s11 = smov 0   ;;  %s725_s12 = smov 0  }
   0x7   :  { %s727_s13 = smov 0   ;;  %s729_s14 = smov 0  }
   0x8 LB: > { %s470_s15 = sadd.s32 4294967295, %s701_s14   ;;  %s471_s16 = sadd.s32 4294967294, %s701_s14   ;;  %s701_s14 = sphi %s729_s14, %s21_s14   ;;  %s697_s13 = sphi %s727_s13, %s862_s13   ;;  %s693_s12 = sphi %s725_s12, %s861_s12   ;;  %s689_s11 = sphi %s723_s11, %s860_s11   ;;  %s685_s10 = sphi %s721_s10, %s859_s10   ;;  %s681_s9 = sphi %s719_s9, %s858_s9  }
   0x9   : > { %s33_s17 = sadd.s32 1, %s697_s13  ;;  %s42_s18 = sadd.s32 1, %s689_s11 }
   0xa   : > { %p35_p0 = scmp.ge.s32.totalorder %s33_s17, 2  ;;  %p49_p1 = scmp.ne.s32.totalorder %s689_s11, %s685_s10 }
   0xb   : > { %p50_p2 = scmp.eq.s32.totalorder %s701_s14, 0  ;;  %p55_p3 = scmp.ne.s32.totalorder %s685_s10, %s681_s9 }
   0xc   : > { %s864_s17 = smov (%p35_p0, %s33_s17), 0  ;;  %p56_p5 = scmp.eq.s32.totalorder %s470_s15, 0 }
   0xd   : > { %p760_p4 = por %p50_p2, %p49_p1  ;;  %s37_s20 = ssub.s32 %s697_s13, %s864_s17 }
   0xe   : > { %p107_p6 = scmp.eq.s32.totalorder %s470_s15, 1  ;;  %p40_p7 = scmp.eq.s32.totalorder %s37_s20, 0 }
   0xf   : > { %p766_p8 = por %p56_p5, %p55_p3  ;;  %p113_p10 = scmp.eq.s32.totalorder %s471_s16, 1 }
  0x10   : > { %p770_p9 = por %p107_p6, %p49_p1  ;;  %p473_p12 = scmp.ge.s32.totalorder %s701_s14, 2 }
  0x11   : > { %s775_s23 = scalar_select %p40_p7, %s689_s11, %s42_s18  }
  0x12   : > { %p777_p11 = por %p113_p10, %p55_p3  ;;  %p504_p13 = scmp.lt.s32.totalorder %s701_s14, 2 }
  0x13   : > { %s133_s25 = sand.u32 1, %s689_s11   ;;  %s485_s27 = sshll.u32 %s697_s13, 3 }
  0x14   : > { %s474_s26 = sshll.u32 %s133_s25, 3  ;;  %s144_s30 = scalar_lea.hbm %s851_s0, %s485_s27 }
  0x15   : > { %s137_s3 = scalar_lea.vmem [#allocation3], %s474_s26  ;;  %s146_s5 = sshll.u32 %s144_s30, 4  ;;  %s147_s5 = int_to_ptr.hbm [resolvable:$true] %s146_s5 }
  0x16   : > { %s148_s4 = sshll.u32 %s137_s3, 4  ;;  %p494_p0 = pnand %p504_p13, %p760_p4  ;;  %s149_s4 = int_to_ptr.vmem [resolvable:$true] %s148_s4 }
  0x17   : > { %p480_p1 = scmp.ge.s32.totalorder %s701_s14, 1  ;;  %p175_p2 = scmp.lt.s32.totalorder %s701_s14, 3 }
  0x18   : > { %s134_s6 = scalar_lea.sflag [#allocation4], %s133_s25  ;;  %s166_s15 = scalar_lea.hbm %s852_s1, %s485_s27 }
  0x19   : > { %496 = dma.hbm_to_vmem [thread:$0]  (!%p494_p0), %s147_s5, 128, %s149_s4, %s134_s6  }
  0x1a   : > { %p176_p3 = pnand %p480_p1, %p175_p2  ;;  %s159_s16 = scalar_lea.vmem [#allocation6], %s474_s26 }
  0x1b   : > { %s170_s18 = sshll.u32 %s159_s16, 4  ;;  %s168_s20 = sshll.u32 %s166_s15, 4  ;;  %s171_s18 = int_to_ptr.vmem [resolvable:$true] %s170_s18  ;;  %s169_s20 = int_to_ptr.hbm [resolvable:$true] %s168_s20 }
  0x1c   : > { %s156_s28 = scalar_lea.sflag [#allocation7], %s133_s25  ;;  %179 = sbr.rel (%p176_p3) target bundleno = 344 (0x158), region = 28 }
  0x1d   : > { %499 = dma.hbm_to_vmem [thread:$0]  (!%p494_p0), %s169_s20, 128, %s171_s18, %s156_s28  }
  0x1e   : > { %s796_s19 = sand.u32 (!%p176_p3), 1, %s685_s10  }
  0x1f   : > { %s481_s29 = sshll.u32 (!%p176_p3), %s796_s19, 3  ;;  %s182_s30 = scalar_lea.sflag (!%p176_p3), [#allocation4], %s796_s19 }
  0x20   : > { %s185_s3 = scalar_lea.vmem (!%p176_p3), [#allocation3], %s481_s29 }
  0x21   : > { %668 = dma.done.wait (%p766_p8), %s182_s30, 128  }
  0x22   : > { %670 = vsyncadd (%p766_p8), %s182_s30, 4294967168  ;;  %s192_s26 = scalar_lea.sflag [#allocation7], %s796_s19  ;;  %s195_s25 = scalar_lea.vmem [#allocation6], %s481_s29 }
  0x23   : > { %672 = dma.done.wait (%p766_p8), %s192_s26, 128  }
  0x24   : > { %674 = vsyncadd (%p766_p8), %s192_s26, 4294967168  ;;  %v229_v0 = vld [vmem:[%s185_s3] sm:$0xff]  ;;  %v230_v3 = vld [vmem:[%s195_s25] sm:$0xff]  ;;  %vm227_vm0 = vcmask 27648   ;;  %v703_v10 = vmov 0.0   ;;  %v348_v24 = vlaneseq  ;;  %s363_s4 = scalar_lea.hbm %s853_s2, %s693_s12  ;;  %s220_s5 = scalar_lea.vmem [#allocation8], %s796_s19 }
  0x25   : > { %232 = vst [vmem:[#allocation1] ss:$2 sm:$0xff] %v229_v0  ;;  %s365_s6 = sshll.u32 %s220_s5, 4  ;;  %s367_s7 = sshll.u32 %s363_s4, 4  ;;  %vm352_vm1 = vcmask 24576   ;;  %s366_s6 = int_to_ptr.vmem [resolvable:$true] %s365_s6  ;;  %s368_s7 = int_to_ptr.hbm [resolvable:$true] %s367_s7 }
  0x26   : > { %228 = vst.msk [vmem:[#allocation2] sm:$0xf] %vm227_vm0, %v703_v10  ;;  %v349_v25 = vand.u32 127, %v348_v24  ;;  %s355_s8 = scalar_lea.sflag [#allocation5], %s796_s19  ;;  %s629_s15 = sshra.s32 %s368_s7, 4  ;;  %s630_s15 = int_to_ptr.hbm [resolvable:$true] %s629_s15 }
  0x27   : > { %s631_s16 = scalar_lea.hbm %s630_s15, 1  ;;  %s635_s20 = scalar_lea.hbm %s853_s2, 2 }
  0x28   : > { %p632_p4 = scmp.ne.s32.totalorder %s630_s15, %s631_s16  ;;  %p636_p7 = scmp.lt.s32.totalorder %s630_s15, %s853_s2 }
  0x29   : > { %p637_p8 = scmp.lt.s32.totalorder %s635_s20, %s631_s16 }
  0x2a   : > { %p633_p5 = pnand %p632_p4, %p770_p9 }
  0x2b   : > { %p638_p10 = por %p637_p8, %p636_p7 }
  0x2c   : > { %v233_v1 = vld.sshfl [vmem:[#allocation1] sm:$0xff pattern:$0x75316420]  ;;  %v234_v2 = vld.sshfl [vmem:[#allocation1 + $0x8] sm:$0xff pattern:$0x75316420]  ;;  %p634_p6 = pneg %p633_p5 }
  0x2d   : > { %237 = vst [vmem:[#allocation1] ss:$2 sm:$0xff] %v229_v0  ;;  %v333_v17 = vld [vmem:[#allocation2] sm:$0xf] }
  0x2e   : > { %p639_p13 = pnand %p638_p10, %p634_p6 }
  0x34   : > { %v238_v4 = vld.sshfl [vmem:[#allocation1] sm:$0xff pattern:$0x75316420]  ;;  %v239_v5 = vld.sshfl [vmem:[#allocation1 + $0x8] sm:$0xff pattern:$0x75316420] }
  0x35   : > { %283 = vst [vmem:[#allocation1] ss:$2 sm:$0xff] %v230_v3  ;;  %257 = vmatpush.xpose.msra.mxu0 %v238_v4  ;;  %277 = vmatpush.xpose.msra.mxu1 %v239_v5 }
  0x38   : > { %258 = vmatmul.f32.vlgmr.msra.gmra.mxu0 %v233_v1  ;;  %278 = vmatmul.f32.vlgmr.msra.gmra.mxu1 %v234_v2 }
  0x3c   : > { %v284_v6 = vld.sshfl [vmem:[#allocation1] sm:$0xff pattern:$0x75316420]  ;;  %v285_v7 = vld.sshfl [vmem:[#allocation1 + $0x8] sm:$0xff pattern:$0x75316420] }
  0x3d   : > { %288 = vst [vmem:[#allocation1] ss:$2 sm:$0xff] %v230_v3 }
  0x44   : > { %v289_v8 = vld.sshfl [vmem:[#allocation1] sm:$0xff pattern:$0x75316420]  ;;  %v290_v9 = vld.sshfl [vmem:[#allocation1 + $0x8] sm:$0xff pattern:$0x75316420] }
  0x45   : > { %308 = vmatpush.xpose.msra.mxu2 %v289_v8  ;;  %328 = vmatpush.xpose.msra.mxu3 %v290_v9 }
  0x48   : > { %309 = vmatmul.f32.vlgmr.msra.gmra.mxu2 %v284_v6  ;;  %329 = vmatmul.f32.vlgmr.msra.gmra.mxu3 %v285_v7 }
  0xb5   : > { %v259_v11 = vpop.f32.mrf.mxu0  ;;  %v279_v12 = vpop.f32.mrf.mxu1 }
  0xb6   : > { %v280_v13 = vadd.f32 %v279_v12, %v259_v11 }
  0xcb   : > { %v310_v14 = vpop.f32.mrf.mxu2  ;;  %v330_v15 = vpop.f32.mrf.mxu3 }
  0xcc   : > { %v331_v16 = vadd.f32 %v330_v15, %v310_v14 }
  0xce   : > { %v334_v18 = vsub.f32 %v280_v13, %v331_v16 }
  0xd0   : > { %v335_v19 = vadd.f32 %v334_v18, %v333_v17 }
  0xd2   : > { %337 = vst.msk [vmem:[#allocation2] sm:$0xf] %vm227_vm0, %v335_v19 }
  0xd9   : > { %v341_v20 = vld [vmem:[#allocation2] sm:$0xf] }
  0xda   : > { %v342_v21 = vmul.f32 0.00390625, %v341_v20 }
  0xdc   : > { %v343_v22 = vmul.f32 %v342_v21, %v342_v21 }
  0xde   : > { %v344_v23 = vsel %vm227_vm0, %v343_v22, 0.0 }
  0xdf   : > { %345 = vadd.xlane.f32.xlu0 %v344_v23 }
 0x152   : > { %v346_v26 = vpop.xlane.xlu0 %345 }
 0x153   : > { %v350_v27 = vperm.slane %v346_v26, %v349_v25 }
 0x155   : > { %353 = vst.msk [vmem:[%s220_s5] sm:$0x1] %vm352_vm1, %v350_v27 }
 0x156   : > { %642 = shalt.err (!%p639_p13)
}
 0x157   : > { %491 = dma.vmem_to_hbm [thread:$0]  (%p770_p9), %s366_s6, 16, %s368_s7, %s355_s8  }
 0x158 PF: > { %s379_s19 = sand.u32 1, %s681_s9   ;;  %p501_p0 = pnand %p473_p12, %p777_p11 }
 0x159   : > { %s380_s30 = scalar_lea.sflag [#allocation5], %s379_s19 }
 0x15a   : > { %p502_p1 = pneg %p501_p0 }
 0x15c   : > { %676 = dma.done.wait (%p502_p1), %s380_s30, 16  }
 0x15d   : > { %678 = vsyncadd (%p502_p1), %s380_s30, 4294967280  ;;  %s21_s14 = sadd.s32 1, %s701_s14   ;;  %s858_s9 = smov %s685_s10 }
 0x15e   : > { %p18_p2 = scmp.ge.s32.totalorder %s21_s14, 4   ;;  %s859_s10 = smov %s689_s11 }
 0x15f   : > { %s860_s11 = smov %s775_s23  ;;  %s861_s12 = smov %s697_s13 }
 0x160   : > { %s862_s13 = smov %s864_s17  ;;  %20 = sbr.rel (!%p18_p2) target bundleno = 8 (0x8), region = 94 }
 0x165   :  { %385 = vsyncpa [#allocation4], 1 }
 0x166   :  { %387 = vsyncpa [#allocation4 + $0x1], 1 }
 0x167   :  { %388 = vsyncpa [#allocation7], 1 }
 0x168   :  { %390 = vsyncpa [#allocation7 + $0x1], 1 }
 0x169   :  { %391 = vsyncpa [#allocation5], 1 }
 0x16a   :  { %393 = vsyncpa [#allocation5 + $0x1], 1 }

</bundles_post_ra>
